<compile_context>
chip_gen: v7x
topology: tpu7x:2x2x1
jax: 0.10.0
libtpu: 0.0.40
codegen_flags: <defaults>
</compile_context>

<pallas_src>
from functools import partial

import jax
import jax.numpy as jnp
from jax.experimental import pallas as pl
from jax.experimental.pallas import tpu as pltpu


# ------------------------- Hardware-aware defaults --------------------------

def _detect_hw_defaults():
    """Pick tile sizes / VMEM limit for the current TPU generation.

    v7x has 64 MiB VMEM per TensorCore (vs 128 MiB on v5e/v6e), so it gets
    smaller row / query tiles and a lower scoped-VMEM limit.
    """
    vmem_bytes = 64 * 1024 * 1024  # conservative fallback (v7x-sized)
    try:
        info = pltpu.get_tpu_info()
        vmem_bytes = int(getattr(info, "vmem_capacity_bytes", vmem_bytes))
    except Exception:
        pass
    if vmem_bytes >= 96 * 1024 * 1024:
        # v5e / v6e class parts (128 MiB VMEM): big tiles, high limit.
        return {"tile_rows": 1024, "tile_q": 512,
                "vmem_limit": 100 * 1024 * 1024}
    # v7x class parts (64 MiB VMEM per TC): smaller tiles, lower limit.
    return {"tile_rows": 256, "tile_q": 128,
            "vmem_limit": 40 * 1024 * 1024}


_HW = _detect_hw_defaults()

# Mutable runtime switches (the Buffered(1) fallback flips this off if the
# running JAX build rejects single-buffered resident blocks).
_RUNTIME = {"single_buffer_weights": True}

_MXU_DTYPE = jnp.bfloat16        # MXU operand dtype (f32 accumulation kept)
_SCORE_BYTES_BUDGET = 4 * 1024 * 1024   # cap on per-head (TQ, M) f32 s + p


def _row_tile(rows, max_tile):
    # full extent if it fits (always legal), otherwise a multiple-of-8 tile.
    return rows if rows <= max_tile else max_tile


def _resident_spec(shape, index_map):
    """BlockSpec for a grid-invariant block (weights / biases).

    Single-buffer it (pipeline_mode=pl.Buffered(1)) since its block index never
    changes -- default double buffering would waste VMEM.  Falls back to the
    default spec on JAX builds without pipeline_mode support.
    """
    if _RUNTIME["single_buffer_weights"]:
        try:
            return pl.BlockSpec(shape, index_map, pipeline_mode=pl.Buffered(1))
        except Exception:
            _RUNTIME["single_buffer_weights"] = False
    return pl.BlockSpec(shape, index_map)


# ----------------------------- Pallas kernels ------------------------------

def _fused_linear_kernel(x_ref, w_ref, b_ref, *out_refs, mxu_dtype):
    """One MXU pass: acc = x @ w_cat + b_cat, sliced into per-output refs."""
    acc = jnp.dot(x_ref[...].astype(mxu_dtype), w_ref[...].astype(mxu_dtype),
                  preferred_element_type=jnp.float32)
    acc = acc + b_ref[...]
    off = 0
    for o_ref in out_refs:
        co = o_ref.shape[-1]
        o_ref[...] = acc[:, off:off + co].astype(o_ref.dtype)
        off += co


def multi_linear(x2d, weights, biases, *, tile_rows=None, vmem_limit=None,
                 mxu_dtype=_MXU_DTYPE):
    """Fused multi-output linear: [x2d @ w_j + b_j] with a single wide dot."""
    tile_rows = tile_rows or _HW["tile_rows"]
    vmem_limit = vmem_limit or _HW["vmem_limit"]
    rows, cin = x2d.shape
    couts = [w.shape[1] for w in weights]
    total = sum(couts)
    w_cat = weights[0] if len(weights) == 1 else jnp.concatenate(weights, axis=1)
    b_cat = biases[0] if len(biases) == 1 else jnp.concatenate(biases, axis=1)

    tr = _row_tile(rows, tile_rows)
    grid = (pl.cdiv(rows, tr),)

    in_specs = [pl.BlockSpec((tr, cin), lambda i: (i, 0)),
                _resident_spec((cin, total), lambda i: (0, 0)),
                _resident_spec((1, total), lambda i: (0, 0))]
    out_specs = [pl.BlockSpec((tr, co), lambda i: (i, 0)) for co in couts]
    out_shape = [jax.ShapeDtypeStruct((rows, co), x2d.dtype) for co in couts]

    flops = 2 * rows * cin * total
    bytes_accessed = x2d.dtype.itemsize * (
        rows * cin + cin * total + total + rows * total)

    return pl.pallas_call(
        partial(_fused_linear_kernel, mxu_dtype=mxu_dtype),
        grid=grid,
        in_specs=in_specs,
        out_specs=out_specs,
        out_shape=out_shape,
        compiler_params=pltpu.CompilerParams(
            dimension_semantics=("parallel",),
            vmem_limit_bytes=vmem_limit),
        cost_estimate=pl.CostEstimate(flops=flops, transcendentals=0,
                                      bytes_accessed=bytes_accessed),
    )(x2d, w_cat, b_cat)


def _sr_kv_kernel(x_ref, srw_ref, srb_ref, g_ref, bb_ref, kvw_ref, kvb_ref,
                  k_ref, v_ref, *, eps, mxu_dtype):
    """1x1-conv (per-token linear) + LayerNorm + fused k/v projection."""
    y = jnp.dot(x_ref[...].astype(mxu_dtype), srw_ref[...].astype(mxu_dtype),
                preferred_element_type=jnp.float32)
    y = y + srb_ref[...]
    mu = jnp.mean(y, axis=-1, keepdims=True)
    var = jnp.mean((y - mu) ** 2, axis=-1, keepdims=True)
    y = (y - mu) * jax.lax.rsqrt(var + eps)
    y = y * g_ref[...] + bb_ref[...]                       # LayerNorm (f32)
    kv = jnp.dot(y.astype(mxu_dtype), kvw_ref[...].astype(mxu_dtype),
                 preferred_element_type=jnp.float32)
    kv = kv + kvb_ref[...]
    c = k_ref.shape[-1]
    k_ref[...] = kv[:, :c].astype(k_ref.dtype)
    v_ref[...] = kv[:, c:].astype(v_ref.dtype)


def sr_kv_projection(xp, sr_w, sr_b, ln_g, ln_b, kv_w, kv_b, *, eps=1e-5,
                     tile_rows=None, vmem_limit=None, mxu_dtype=_MXU_DTYPE):
    """Fused sr-branch tail on the pooled tokens: conv1x1 -> LN -> k,v."""
    tile_rows = tile_rows or _HW["tile_rows"]
    vmem_limit = vmem_limit or _HW["vmem_limit"]
    rows, cin = xp.shape
    c = sr_w.shape[1]
    tr = _row_tile(rows, tile_rows)
    grid = (pl.cdiv(rows, tr),)

    flops = 2 * rows * cin * c + 2 * rows * c * (2 * c) + 8 * rows * c
    bytes_accessed = xp.dtype.itemsize * (
        rows * cin + cin * c + 3 * c + c * 2 * c + 2 * c + 2 * rows * c)

    return pl.pallas_call(
        partial(_sr_kv_kernel, eps=eps, mxu_dtype=mxu_dtype),
        grid=grid,
        in_specs=[pl.BlockSpec((tr, cin), lambda i: (i, 0)),
                  _resident_spec((cin, c), lambda i: (0, 0)),
                  _resident_spec((1, c), lambda i: (0, 0)),
                  _resident_spec((1, c), lambda i: (0, 0)),
                  _resident_spec((1, c), lambda i: (0, 0)),
                  _resident_spec((c, 2 * c), lambda i: (0, 0)),
                  _resident_spec((1, 2 * c), lambda i: (0, 0))],
        out_specs=[pl.BlockSpec((tr, c), lambda i: (i, 0)),
                   pl.BlockSpec((tr, c), lambda i: (i, 0))],
        out_shape=[jax.ShapeDtypeStruct((rows, c), xp.dtype),
                   jax.ShapeDtypeStruct((rows, c), xp.dtype)],
        compiler_params=pltpu.CompilerParams(
            dimension_semantics=("parallel",),
            vmem_limit_bytes=vmem_limit),
        cost_estimate=pl.CostEstimate(flops=flops, transcendentals=2 * rows,
                                      bytes_accessed=bytes_accessed),
    )(xp, sr_w, sr_b, ln_g, ln_b, kv_w, kv_b)


def _attn_kernel(q_ref, k_ref, v_ref, o_ref, *, num_heads, head_dim, mxu_dtype):
    # Batch dim is squeezed by the BlockSpec: q/o are (TQ, C), k/v are (M, C).
    # The softmax scale was folded into the q projection in the wrapper.
    q = q_ref[...]
    k = k_ref[...]
    v = v_ref[...]
    for h in range(num_heads):                 # static unroll; heads share blocks
        sl = slice(h * head_dim, (h + 1) * head_dim)
        s = jax.lax.dot_general(q[:, sl].astype(mxu_dtype),
                                k[:, sl].astype(mxu_dtype),
                                (((1,), (1,)), ((), ())),
                                preferred_element_type=jnp.float32)  # (TQ, M) f32
        s_max = jnp.max(s, axis=-1, keepdims=True)
        p = jnp.exp(s - s_max)                                       # f32 softmax
        denom = jnp.sum(p, axis=-1, keepdims=True)
        # attn_drop has p=0.0 -> identity.
        oh = jnp.dot(p.astype(mxu_dtype), v[:, sl].astype(mxu_dtype),
                     preferred_element_type=jnp.float32)
        # Write the head's slice directly (no head_outs list / lane concat);
        # reciprocal on the EUP slot.
        o_ref[:, sl] = (oh * pl.reciprocal(denom, approx=True)).astype(o_ref.dtype)


def attention(q, k, v, *, num_heads, tile_q=None, vmem_limit=None,
              mxu_dtype=_MXU_DTYPE):
    """Per-head softmax(q k^T) v on lane-dense (B, tokens, C) layouts.

    Grid = (batch, query tiles); K/V stay fully resident per step (SegFormer's
    spatially-reduced M is small).  The softmax scale is pre-folded into q.
    """
    # TODO(synk): for very large M (sr_ratio==1 at stage-1 token counts) add a
    # KV grid axis with online softmax (m/l/acc scratch) instead of full-M
    # residency; the tq cap below only bounds the (TQ, M) score working set.
    tile_q = tile_q or _HW["tile_q"]
    vmem_limit = vmem_limit or _HW["vmem_limit"]
    b, n, chans = q.shape
    m = k.shape[1]
    head_dim = chans // num_heads
    tq = _row_tile(n, tile_q)
    # Bound the per-head (TQ, M) f32 score + prob intermediates.
    while tq > 64 and tq % 16 == 0 and tq * m * 8 > _SCORE_BYTES_BUDGET:
        tq //= 2
    grid = (b, pl.cdiv(n, tq))

    flops = 4 * b * n * m * chans                 # QK^T and PV matmuls
    transcendentals = b * num_heads * n * m       # exp
    bytes_accessed = q.dtype.itemsize * (2 * b * n * chans + 2 * b * m * chans)

    return pl.pallas_call(
        partial(_attn_kernel, num_heads=num_heads, head_dim=head_dim,
                mxu_dtype=mxu_dtype),
        grid=grid,
        in_specs=[pl.BlockSpec((None, tq, chans), lambda i, j: (i, j, 0)),
                  pl.BlockSpec((None, m, chans), lambda i, j: (i, 0, 0)),
                  pl.BlockSpec((None, m, chans), lambda i, j: (i, 0, 0))],
        out_specs=pl.BlockSpec((None, tq, chans), lambda i, j: (i, j, 0)),
        out_shape=jax.ShapeDtypeStruct((b, n, chans), q.dtype),
        compiler_params=pltpu.CompilerParams(
            dimension_semantics=("parallel", "parallel"),
            vmem_limit_bytes=vmem_limit),
        cost_estimate=pl.CostEstimate(flops=flops, transcendentals=transcendentals,
                                      bytes_accessed=bytes_accessed),
    )(q, k, v)


# ------------------------------ Forward pass -------------------------------

def efficient_attention_forward(params, x, H, W, *, num_heads, sr_ratio,
                                tile_rows=None, tile_q=None, vmem_limit=None,
                                mxu_dtype=_MXU_DTYPE):
    B, N, C = x.shape
    head_dim = C // num_heads
    scale = head_dim ** (-0.5)

    tile_rows = tile_rows or _HW["tile_rows"]
    tile_q = tile_q or _HW["tile_q"]
    vmem_limit = vmem_limit or _HW["vmem_limit"]

    # Fold the softmax scale into the q projection once (removes a per-head,
    # per-tile VALU multiply inside the attention kernel).
    q_w = params["q_w"] * scale
    q_b = params["q_b"] * scale

    # Split the packed kv weight: matches PyTorch's kv(x).reshape(B, M, 2, nh, hd)
    # -> first C output cols are k, last C are v.
    k_w, v_w = params["kv_w"][:, :C], params["kv_w"][:, C:]
    k_b, v_b = params["kv_b"][:, :C], params["kv_b"][:, C:]

    x2d = x.reshape(B * N, C)

    if sr_ratio == 1:
        # Fused q/k/v projection: one MXU pass over x, three lane-dense outputs.
        q2d, k2d, v2d = multi_linear(
            x2d, [q_w, k_w, v_w], [q_b, k_b, v_b],
            tile_rows=tile_rows, vmem_limit=vmem_limit, mxu_dtype=mxu_dtype)
        M = N
    else:
        (q2d,) = multi_linear(x2d, [q_w], [q_b], tile_rows=tile_rows,
                              vmem_limit=vmem_limit, mxu_dtype=mxu_dtype)
        # Channels-last AdaptiveAvgPool2d(sr): no NCHW transposes.
        # TODO(synk): assumes H, W divisible by sr_ratio (PyTorch's uneven
        # adaptive bins are not handled); the tiny pooled reduction itself is
        # left to XLA rather than fused into the kernel.
        M = sr_ratio * sr_ratio
        xp = x.reshape(B, sr_ratio, H // sr_ratio, sr_ratio, W // sr_ratio, C)
        xp = xp.mean(axis=(2, 4)).reshape(B * M, C)
        # Fused 1x1-conv + LayerNorm + k/v projection: one launch, no HBM
        # round trips for the tiny (B*sr^2, C) intermediates.
        k2d, v2d = sr_kv_projection(
            xp, params["sr_w"], params["sr_b"], params["ln_g"], params["ln_b"],
            params["kv_w"], params["kv_b"],
            tile_rows=tile_rows, vmem_limit=vmem_limit, mxu_dtype=mxu_dtype)

    out = attention(q2d.reshape(B, N, C), k2d.reshape(B, M, C),
                    v2d.reshape(B, M, C), num_heads=num_heads, tile_q=tile_q,
                    vmem_limit=vmem_limit, mxu_dtype=mxu_dtype)     # (B, N, C)

    # Output projection (proj_drop p=0 -> identity).
    (out2d,) = multi_linear(out.reshape(B * N, C),
                            [params["proj_w"]], [params["proj_b"]],
                            tile_rows=tile_rows, vmem_limit=vmem_limit,
                            mxu_dtype=mxu_dtype)
    return out2d.reshape(B, N, C)


# -------------------------- Pure-JAX reference -----------------------------

def reference_forward(params, x, H, W, *, num_heads, sr_ratio):
    B, N, C = x.shape
    hd = C // num_heads
    scale = hd ** (-0.5)
    with jax.default_matmul_precision("highest"):
        q = x @ params["q_w"] + params["q_b"]
        q = q.reshape(B, N, num_heads, hd).transpose(0, 2, 1, 3)
        if sr_ratio > 1:
            x_ = x.transpose(0, 2, 1).reshape(B, C, H, W)
            x_ = x_.reshape(B, C, sr_ratio, H // sr_ratio,
                            sr_ratio, W // sr_ratio).mean(axis=(3, 5))
            M = sr_ratio * sr_ratio
            xt = x_.reshape(B, C, M).transpose(0, 2, 1)
            xt = xt @ params["sr_w"] + params["sr_b"]
            mu = xt.mean(-1, keepdims=True)
            var = ((xt - mu) ** 2).mean(-1, keepdims=True)
            xt = (xt - mu) * jax.lax.rsqrt(var + 1e-5) * params["ln_g"] + params["ln_b"]
            kv_in = xt
        else:
            M = N
            kv_in = x
        kv = kv_in @ params["kv_w"] + params["kv_b"]
        kv = kv.reshape(B, M, 2, num_heads, hd).transpose(2, 0, 3, 1, 4)
        k, v = kv[0], kv[1]
        attn = jnp.einsum("bhnd,bhmd->bhnm", q, k) * scale
        attn = jax.nn.softmax(attn, axis=-1)
        o = jnp.einsum("bhnm,bhmd->bhnd", attn, v)
        o = o.transpose(0, 2, 1, 3).reshape(B, N, C)
        o = o @ params["proj_w"] + params["proj_b"]
    return o


# --------------------------------- Setup -----------------------------------

def init_params(key, dim):
    ks = jax.random.split(key, 6)
    s = 0.02
    return {
        # stored as (Cin, Cout) so kernels compute x @ W + b
        "q_w":    jax.random.normal(ks[0], (dim, dim), jnp.float32) * s,
        "q_b":    jnp.zeros((1, dim), jnp.float32),        # qkv_bias=False
        "kv_w":   jax.random.normal(ks[1], (dim, 2 * dim), jnp.float32) * s,
        "kv_b":   jnp.zeros((1, 2 * dim), jnp.float32),    # qkv_bias=False
        "proj_w": jax.random.normal(ks[2], (dim, dim), jnp.float32) * s,
        "proj_b": jax.random.normal(ks[3], (1, dim), jnp.float32) * s,
        # sr branch: 1x1 conv weight (C,C,1,1) squeezed -> (Cin, Cout), + bias
        "sr_w":   jax.random.normal(ks[4], (dim, dim), jnp.float32) * s,
        "sr_b":   jax.random.normal(ks[5], (1, dim), jnp.float32) * s,
        "ln_g":   jnp.ones((1, dim), jnp.float32),
        "ln_b":   jnp.zeros((1, dim), jnp.float32),
    }


def run_tests():
    B, C, Hs, Ws = 2, 32, 8, 8
    num_heads = 4
    N = Hs * Ws

    key = jax.random.PRNGKey(0)
    pkey, xkey = jax.random.split(key)
    params = init_params(pkey, C)
    x = jax.random.normal(xkey, (B, N, C), jnp.float32)

    ok = True
    # Run with the generation-aware default tiles and with tiny tiles so the
    # multi-step row / query grids are actually exercised at these small shapes.
    for sr_ratio in (1, 2):
        for tr, tq in ((None, None), (32, 32)):
            out = efficient_attention_forward(
                params, x, Hs, Ws, num_heads=num_heads, sr_ratio=sr_ratio,
                tile_rows=tr, tile_q=tq)
            out = jax.block_until_ready(out)
            ref = reference_forward(params, x, Hs, Ws,
                                    num_heads=num_heads, sr_ratio=sr_ratio)
            # bf16 MXU operands + approximate EUP reciprocal -> 2e-2 tolerance.
            if not jnp.allclose(out, ref, atol=2e-2, rtol=2e-2):
                ok = False
                print(f"MISMATCH sr_ratio={sr_ratio} tiles=({tr},{tq}): "
                      f"max err {float(jnp.max(jnp.abs(out - ref)))}")
    return ok


if __name__ == "__main__":
    try:
        ok = run_tests()
    except Exception:
        # Fallback for JAX builds that reject single-buffered (Buffered(1))
        # resident-weight BlockSpecs: retry with default double buffering.
        _RUNTIME["single_buffer_weights"] = False
        ok = run_tests()
    if ok:
        print("KERNEL_OK")
</pallas_src>

<mosaic_0001>
module attributes {stable_mosaic.version = 11 : i64} {
  func.func @_fused_linear_kernel(%arg0: i32, %arg1: memref<128x32xf32, #tpu.memory_space<vmem>>, %arg2: memref<32x96xf32, #tpu.memory_space<vmem>>, %arg3: memref<1x96xf32, #tpu.memory_space<vmem>>, %arg4: memref<128x32xf32, #tpu.memory_space<vmem>>, %arg5: memref<128x32xf32, #tpu.memory_space<vmem>>, %arg6: memref<128x32xf32, #tpu.memory_space<vmem>>) attributes {dimension_semantics = [#tpu.dimension_semantics<parallel>], iteration_bounds = array<i64: 1>, scalar_prefetch = 0 : i64, scratch_operands = 0 : i64, tpu.core_type = #tpu.core_type<tc>, window_params = [{transform_indices = @transform_0, window_bounds = array<i64: 128, 32>}, {pipeline_mode = #tpu.pipeline_mode<synchronous>, transform_indices = @transform_1, window_bounds = array<i64: 32, 96>}, {pipeline_mode = #tpu.pipeline_mode<synchronous>, transform_indices = @transform_2, window_bounds = array<i64: 1, 96>}, {transform_indices = @transform_3, window_bounds = array<i64: 128, 32>}, {transform_indices = @transform_4, window_bounds = array<i64: 128, 32>}, {transform_indices = @transform_5, window_bounds = array<i64: 128, 32>}]} {
    %c0 = arith.constant 0 : index
    %c0_0 = arith.constant 0 : index
    %0 = vector.load %arg1[%c0, %c0_0] : memref<128x32xf32, #tpu.memory_space<vmem>>, vector<128x32xf32>
    %1 = arith.truncf %0 : vector<128x32xf32> to vector<128x32xbf16>
    %c0_1 = arith.constant 0 : index
    %c0_2 = arith.constant 0 : index
    %2 = vector.load %arg2[%c0_1, %c0_2] : memref<32x96xf32, #tpu.memory_space<vmem>>, vector<32x96xf32>
    %3 = arith.truncf %2 : vector<32x96xf32> to vector<32x96xbf16>
    %cst = arith.constant dense<0.000000e+00> : vector<128x96xf32>
    %4 = tpu.matmul %1, %3, %cst {dimension_numbers = #tpu.dot_dimension_numbers<[1], [0], [0], [1], [0, 0, 1, 1], [], []>} : vector<128x32xbf16>, vector<32x96xbf16>, vector<128x96xf32> -> vector<128x96xf32>
    %c0_3 = arith.constant 0 : index
    %c0_4 = arith.constant 0 : index
    %5 = vector.load %arg3[%c0_3, %c0_4] : memref<1x96xf32, #tpu.memory_space<vmem>>, vector<1x96xf32>
    %6 = vector.broadcast %5 : vector<1x96xf32> to vector<128x96xf32>
    %7 = arith.addf %4, %6 : vector<128x96xf32>
    %8 = vector.extract_strided_slice %7 {offsets = [0, 0], sizes = [128, 32], strides = [1, 1]} : vector<128x96xf32> to vector<128x32xf32>
    %c0_5 = arith.constant 0 : index
    %c0_6 = arith.constant 0 : index
    %9 = vector.load %arg4[%c0_5, %c0_6] : memref<128x32xf32, #tpu.memory_space<vmem>>, vector<128x32xf32>
    tpu.vector_store %arg4[%c0_5, %c0_6], %8 {strides = array<i32>} : memref<128x32xf32, #tpu.memory_space<vmem>>, vector<128x32xf32>,
    %10 = vector.extract_strided_slice %7 {offsets = [0, 32], sizes = [128, 32], strides = [1, 1]} : vector<128x96xf32> to vector<128x32xf32>
    %c0_7 = arith.constant 0 : index
    %c0_8 = arith.constant 0 : index
    %11 = vector.load %arg5[%c0_7, %c0_8] : memref<128x32xf32, #tpu.memory_space<vmem>>, vector<128x32xf32>
    tpu.vector_store %arg5[%c0_7, %c0_8], %10 {strides = array<i32>} : memref<128x32xf32, #tpu.memory_space<vmem>>, vector<128x32xf32>,
    %12 = vector.extract_strided_slice %7 {offsets = [0, 64], sizes = [128, 32], strides = [1, 1]} : vector<128x96xf32> to vector<128x32xf32>
    %c0_9 = arith.constant 0 : index
    %c0_10 = arith.constant 0 : index
    %13 = vector.load %arg6[%c0_9, %c0_10] : memref<128x32xf32, #tpu.memory_space<vmem>>, vector<128x32xf32>
    tpu.vector_store %arg6[%c0_9, %c0_10], %12 {strides = array<i32>} : memref<128x32xf32, #tpu.memory_space<vmem>>, vector<128x32xf32>,
    return
  }
  func.func @transform_0(%arg0: i32) -> (i32, i32) {
    %c0_i32 = arith.constant 0 : i32
    %c0_i32_0 = arith.constant 0 : i32
    return %arg0, %c0_i32 : i32, i32
  }
  func.func @transform_1(%arg0: i32) -> (i32, i32) {
    %c0_i32 = arith.constant 0 : i32
    %c0_i32_0 = arith.constant 0 : i32
    %c0_i32_1 = arith.constant 0 : i32
    return %c0_i32, %c0_i32_0 : i32, i32
  }
  func.func @transform_2(%arg0: i32) -> (i32, i32) {
    %c0_i32 = arith.constant 0 : i32
    %c0_i32_0 = arith.constant 0 : i32
    %c0_i32_1 = arith.constant 0 : i32
    return %c0_i32, %c0_i32_0 : i32, i32
  }
  func.func @transform_3(%arg0: i32) -> (i32, i32) {
    %c0_i32 = arith.constant 0 : i32
    %c0_i32_0 = arith.constant 0 : i32
    return %arg0, %c0_i32 : i32, i32
  }
  func.func @transform_4(%arg0: i32) -> (i32, i32) {
    %c0_i32 = arith.constant 0 : i32
    %c0_i32_0 = arith.constant 0 : i32
    return %arg0, %c0_i32 : i32, i32
  }
  func.func @transform_5(%arg0: i32) -> (i32, i32) {
    %c0_i32 = arith.constant 0 : i32
    %c0_i32_0 = arith.constant 0 : i32
    return %arg0, %c0_i32 : i32, i32
  }
}

module attributes {stable_mosaic.version = 11 : i64} {
  func.func @_fused_linear_kernel(%arg0: i32, %arg1: memref<128x32xf32, #tpu.memory_space<vmem>>, %arg2: memref<32x96xf32, #tpu.memory_space<vmem>>, %arg3: memref<1x96xf32, #tpu.memory_space<vmem>>, %arg4: memref<128x32xf32, #tpu.memory_space<vmem>>, %arg5: memref<128x32xf32, #tpu.memory_space<vmem>>, %arg6: memref<128x32xf32, #tpu.memory_space<vmem>>) attributes {dimension_semantics = [#tpu.dimension_semantics<parallel>], iteration_bounds = array<i64: 1>, scalar_prefetch = 0 : i64, scratch_operands = 0 : i64, tpu.core_type = #tpu.core_type<tc>, window_params = [{transform_indices = @transform_0, window_bounds = array<i64: 128, 32>}, {pipeline_mode = #tpu.pipeline_mode<synchronous>, transform_indices = @transform_1, window_bounds = array<i64: 32, 96>}, {pipeline_mode = #tpu.pipeline_mode<synchronous>, transform_indices = @transform_2, window_bounds = array<i64: 1, 96>}, {transform_indices = @transform_3, window_bounds = array<i64: 128, 32>}, {transform_indices = @transform_4, window_bounds = array<i64: 128, 32>}, {transform_indices = @transform_5, window_bounds = array<i64: 128, 32>}]} {
    %c0 = arith.constant 0 : index
    %c0_0 = arith.constant 0 : index
    %0 = vector.load %arg1[%c0, %c0_0] : memref<128x32xf32, #tpu.memory_space<vmem>>, vector<128x32xf32>
    %1 = arith.truncf %0 : vector<128x32xf32> to vector<128x32xbf16>
    %c0_1 = arith.constant 0 : index
    %c0_2 = arith.constant 0 : index
    %2 = vector.load %arg2[%c0_1, %c0_2] : memref<32x96xf32, #tpu.memory_space<vmem>>, vector<32x96xf32>
    %3 = arith.truncf %2 : vector<32x96xf32> to vector<32x96xbf16>
    %cst = arith.constant dense<0.000000e+00> : vector<128x96xf32>
    %4 = tpu.matmul %1, %3, %cst {dimension_numbers = #tpu.dot_dimension_numbers<[1], [0], [0], [1], [0, 0, 1, 1], [], []>} : vector<128x32xbf16>, vector<32x96xbf16>, vector<128x96xf32> -> vector<128x96xf32>
    %c0_3 = arith.constant 0 : index
    %c0_4 = arith.constant 0 : index
    %5 = vector.load %arg3[%c0_3, %c0_4] : memref<1x96xf32, #tpu.memory_space<vmem>>, vector<1x96xf32>
    %6 = vector.broadcast %5 : vector<1x96xf32> to vector<128x96xf32>
    %7 = arith.addf %4, %6 : vector<128x96xf32>
    %8 = vector.extract_strided_slice %7 {offsets = [0, 0], sizes = [128, 32], strides = [1, 1]} : vector<128x96xf32> to vector<128x32xf32>
    %c0_5 = arith.constant 0 : index
    %c0_6 = arith.constant 0 : index
    %9 = vector.load %arg4[%c0_5, %c0_6] : memref<128x32xf32, #tpu.memory_space<vmem>>, vector<128x32xf32>
    tpu.vector_store %arg4[%c0_5, %c0_6], %8 {strides = array<i32>} : memref<128x32xf32, #tpu.memory_space<vmem>>, vector<128x32xf32>,
    %10 = vector.extract_strided_slice %7 {offsets = [0, 32], sizes = [128, 32], strides = [1, 1]} : vector<128x96xf32> to vector<128x32xf32>
    %c0_7 = arith.constant 0 : index
    %c0_8 = arith.constant 0 : index
    %11 = vector.load %arg5[%c0_7, %c0_8] : memref<128x32xf32, #tpu.memory_space<vmem>>, vector<128x32xf32>
    tpu.vector_store %arg5[%c0_7, %c0_8], %10 {strides = array<i32>} : memref<128x32xf32, #tpu.memory_space<vmem>>, vector<128x32xf32>,
    %12 = vector.extract_strided_slice %7 {offsets = [0, 64], sizes = [128, 32], strides = [1, 1]} : vector<128x96xf32> to vector<128x32xf32>
    %c0_9 = arith.constant 0 : index
    %c0_10 = arith.constant 0 : index
    %13 = vector.load %arg6[%c0_9, %c0_10] : memref<128x32xf32, #tpu.memory_space<vmem>>, vector<128x32xf32>
    tpu.vector_store %arg6[%c0_9, %c0_10], %12 {strides = array<i32>} : memref<128x32xf32, #tpu.memory_space<vmem>>, vector<128x32xf32>,
    return
  }
  func.func @transform_0(%arg0: i32) -> (i32, i32) {
    %c0_i32 = arith.constant 0 : i32
    %c0_i32_0 = arith.constant 0 : i32
    return %arg0, %c0_i32 : i32, i32
  }
  func.func @transform_1(%arg0: i32) -> (i32, i32) {
    %c0_i32 = arith.constant 0 : i32
    %c0_i32_0 = arith.constant 0 : i32
    %c0_i32_1 = arith.constant 0 : i32
    return %c0_i32, %c0_i32_0 : i32, i32
  }
  func.func @transform_2(%arg0: i32) -> (i32, i32) {
    %c0_i32 = arith.constant 0 : i32
    %c0_i32_0 = arith.constant 0 : i32
    %c0_i32_1 = arith.constant 0 : i32
    return %c0_i32, %c0_i32_0 : i32, i32
  }
  func.func @transform_3(%arg0: i32) -> (i32, i32) {
    %c0_i32 = arith.constant 0 : i32
    %c0_i32_0 = arith.constant 0 : i32
    return %arg0, %c0_i32 : i32, i32
  }
  func.func @transform_4(%arg0: i32) -> (i32, i32) {
    %c0_i32 = arith.constant 0 : i32
    %c0_i32_0 = arith.constant 0 : i32
    return %arg0, %c0_i32 : i32, i32
  }
  func.func @transform_5(%arg0: i32) -> (i32, i32) {
    %c0_i32 = arith.constant 0 : i32
    %c0_i32_0 = arith.constant 0 : i32
    return %arg0, %c0_i32 : i32, i32
  }
}

</mosaic_0001>

<bundles_post_ra>
// kernel: tpu_custom_call.1
= control target key start
LH: loop header
LB: loop body
LE: loop exit
PB: predicated region body
PF: predicated region fallthrough
CT: control target
= control target key end

     0   :  { %vm55_vm0 = vcmask 261120   ;;  %s395_s23 = smov 64   ;;  %s721_s1 = inlined_call_operand.vmem [shape: f32[32,96], index: 1, kind: input, shape index: {}]   ;;  %s722_s0 = inlined_call_operand.vmem [shape: f32[128,32], index: 0, kind: input, shape index: {}]   ;;  %s723_s2 = inlined_call_operand.vmem [shape: f32[1,96], index: 2, kind: input, shape index: {}]   ;;  %s724_s3 = inlined_call_operand.vmem [shape: f32[128,32], index: 3, kind: output, shape index: {0}]   ;;  %s725_s4 = inlined_call_operand.vmem [shape: f32[128,32], index: 4, kind: output, shape index: {1}]   ;;  %s726_s5 = inlined_call_operand.vmem [shape: f32[128,32], index: 5, kind: output, shape index: {2}]  }
   0x1   :  { %v42_v0 = vld [vmem:[%s721_s1] sm:$0xff]  ;;  %v43_v1 = vld [vmem:[%s721_s1 + $0x8] sm:$0xff]  ;;  %v44_v2 = vld [vmem:[%s721_s1 + $0x10] sm:$0xff] }
   0x2   :  { %v46_v3 = vpack.c.bf16 %v43_v1, %v42_v0  ;;  %v45_v4 = vld [vmem:[%s721_s1 + $0x18] sm:$0xff]  ;;  %v18_v5 = vld [vmem:[%s722_s0] sm:$0xff]  ;;  %v19_v6 = vld [vmem:[%s722_s0 + $0x8] sm:$0xff] }
   0x3   :  { %v47_v7 = vpack.c.bf16 %v45_v4, %v44_v2  ;;  %v34_v8 = vpack.c.bf16 %v19_v6, %v18_v5  ;;  %v26_v9 = vld [vmem:[%s722_s0 + $0x40] sm:$0xff]  ;;  %v27_v10 = vld [vmem:[%s722_s0 + $0x48] sm:$0xff]  ;;  %v20_v12 = vld [vmem:[%s722_s0 + $0x10] sm:$0xff] }
   0x4   :  { %368 = vmatprep.subr.bf16.mxu0 %v46_v3  ;;  %388 = vmatprep.subr.bf16.mxu1 %v46_v3  ;;  %v38_v11 = vpack.c.bf16 %v27_v10, %v26_v9  ;;  %v21_v13 = vld [vmem:[%s722_s0 + $0x18] sm:$0xff]  ;;  %v28_v14 = vld [vmem:[%s722_s0 + $0x50] sm:$0xff]  ;;  %v22_v16 = vld [vmem:[%s722_s0 + $0x20] sm:$0xff] }
   0x5   :  { %369 = vmatpush3.bf16.msra.mxu0 %v46_v3  ;;  %390 = vmatpush3.bf16.msra.mxu1 %v46_v3  ;;  %v29_v15 = vld [vmem:[%s722_s0 + $0x58] sm:$0xff]  ;;  %v23_v17 = vld [vmem:[%s722_s0 + $0x28] sm:$0xff]  ;;  %v30_v18 = vld [vmem:[%s722_s0 + $0x60] sm:$0xff]  ;;  %v35_v20 = vpack.c.bf16 %v21_v13, %v20_v12 }
   0x6   :  { %370 = vmatprep.subr.bf16.mxu0 %v47_v7  ;;  %389 = vmatprep.subr.bf16.mxu1 %v47_v7  ;;  %v31_v19 = vld [vmem:[%s722_s0 + $0x68] sm:$0xff]  ;;  %v39_v21 = vpack.c.bf16 %v29_v15, %v28_v14  ;;  %v36_v22 = vpack.c.bf16 %v23_v17, %v22_v16  ;;  %v24_v24 = vld [vmem:[%s722_s0 + $0x30] sm:$0xff]  ;;  %v25_v25 = vld [vmem:[%s722_s0 + $0x38] sm:$0xff] }
   0x7   :  { %372 = vmatprep.mubr.msk.bf16.mxu0 %vm55_vm0, %v34_v8  ;;  %380 = vmatprep.mubr.msk.bf16.mxu1 %vm55_vm0, %v38_v11  ;;  %v40_v23 = vpack.c.bf16 %v31_v19, %v30_v18  ;;  %v32_v26 = vld [vmem:[%s722_s0 + $0x70] sm:$0xff]  ;;  %v33_v27 = vld [vmem:[%s722_s0 + $0x78] sm:$0xff]  ;;  %v37_v28 = vpack.c.bf16 %v25_v25, %v24_v24  ;;  %v349_v30 = vld [vmem:[%s723_s2] ss:$0 sm:$0xff]  ;;  %s394_s2 = smov 96  }
   0x8   :  { %v41_v29 = vpack.c.bf16 %v33_v27, %v32_v26 }
   0x9   :  { %371 = vmatpush3.bf16.msra.mxu0 %v47_v7  ;;  %391 = vmatpush3.bf16.msra.mxu1 %v47_v7 }
   0xc   :  { %373 = vmatmul.mubr.msk.bf16.vlgmr.msra.gmra.mrb[0].mxu0 %vm55_vm0, %v35_v20  ;;  %381 = vmatmul.mubr.msk.bf16.vlgmr.msra.gmra.mrb[0].mxu1 %vm55_vm0, %v39_v21 }
   0xd   :  { %376 = vmatprep.mubr.msk.bf16.mxu0 %vm55_vm0, %v36_v22  ;;  %384 = vmatprep.mubr.msk.bf16.mxu1 %vm55_vm0, %v40_v23 }
  0x14   :  { %377 = vmatmul.mubr.msk.bf16.gmra.mrb[4].mxu0 %vm55_vm0, %v37_v28  ;;  %385 = vmatmul.mubr.msk.bf16.gmra.mrb[4].mxu1 %vm55_vm0, %v41_v29 }
  0xdf   :  { %v374_v31 = vpop.f32.mrb[0].mxu0  ;;  %v382_v32 = vpop.f32.mrb[0].mxu1 }
  0xe0   :  { %v123_v33 = vadd.f32 %v374_v31, %v349_v30  ;;  %v155_v34 = vadd.f32 %v382_v32, %v349_v30  ;;  %v114_v35 = vpop.f32.mrb[1].mxu0  ;;  %v146_v36 = vpop.f32.mrb[1].mxu1 }
  0xe1   :  { %v115_v37 = vadd.f32 %v349_v30, %v114_v35  ;;  %v147_v38 = vadd.f32 %v349_v30, %v146_v36  ;;  %v375_v39 = vpop.f32.mrb[2].mxu0  ;;  %v383_v40 = vpop.f32.mrb[2].mxu1 }
  0xe2   :  { %179 = vst.msk [vmem:[%s724_s3 + $0x10] sm:$0xff] %vm55_vm0, %v123_v33  ;;  %187 = vst.msk [vmem:[%s724_s3 + $0x50] sm:$0xff] %vm55_vm0, %v155_v34  ;;  %v126_v41 = vadd.f32 %v375_v39, %v349_v30  ;;  %v158_v42 = vadd.f32 %v383_v40, %v349_v30  ;;  %229 = vrot.lane.b32.xlu0 %v155_v34, %s394_s2  ;;  %v149_v43 = vpop.f32.mrb[3].mxu1  ;;  %213 = vrot.lane.b32.xlu1 %v123_v33, %s394_s2  ;;  %v117_v44 = vpop.f32.mrb[3].mxu0 }
  0xe3   :  { %177 = vst.msk [vmem:[%s724_s3] sm:$0xff] %vm55_vm0, %v115_v37  ;;  %185 = vst.msk [vmem:[%s724_s3 + $0x40] sm:$0xff] %vm55_vm0, %v147_v38  ;;  %v150_v45 = vadd.f32 %v349_v30, %v149_v43  ;;  %v118_v46 = vadd.f32 %v349_v30, %v117_v44 }
  0xe4   :  { %180 = vst.msk [vmem:[%s724_s3 + $0x18] sm:$0xff] %vm55_vm0, %v126_v41  ;;  %188 = vst.msk [vmem:[%s724_s3 + $0x58] sm:$0xff] %vm55_vm0, %v158_v42 }
  0xe5   :  { %186 = vst.msk [vmem:[%s724_s3 + $0x48] sm:$0xff] %vm55_vm0, %v150_v45  ;;  %178 = vst.msk [vmem:[%s724_s3 + $0x8] sm:$0xff] %vm55_vm0, %v118_v46 }
  0xe6   :  { %277 = vrot.lane.b32.xlu0 %v123_v33, %s395_s23  ;;  %215 = vrot.lane.b32.xlu1 %v126_v41, %s394_s2 }
  0xe7   :  { %v378_v47 = vpop.f32.mrb[4].mxu0  ;;  %v386_v48 = vpop.f32.mrb[4].mxu1 }
  0xe8   :  { %v139_v49 = vadd.f32 %v378_v47, %v349_v30  ;;  %v130_v50 = vpop.f32.mrb[5].mxu0  ;;  %v171_v51 = vadd.f32 %v386_v48, %v349_v30  ;;  %v162_v52 = vpop.f32.mrb[5].mxu1 }
  0xe9   :  { %v131_v53 = vadd.f32 %v349_v30, %v130_v50  ;;  %v379_v54 = vpop.f32.mrb[6].mxu0  ;;  %v163_v55 = vadd.f32 %v349_v30, %v162_v52  ;;  %v387_v56 = vpop.f32.mrb[6].mxu1 }
  0xea   :  { %293 = vrot.lane.b32.xlu0 %v155_v34, %s395_s23  ;;  %231 = vrot.lane.b32.xlu1 %v158_v42, %s394_s2  ;;  %183 = vst.msk [vmem:[%s724_s3 + $0x30] sm:$0xff] %vm55_vm0, %v139_v49  ;;  %v142_v57 = vadd.f32 %v379_v54, %v349_v30  ;;  %v133_v58 = vpop.f32.mrb[7].mxu0  ;;  %191 = vst.msk [vmem:[%s724_s3 + $0x70] sm:$0xff] %vm55_vm0, %v171_v51  ;;  %v174_v59 = vadd.f32 %v387_v56, %v349_v30  ;;  %v165_v60 = vpop.f32.mrb[7].mxu1 }
  0xeb   :  { %181 = vst.msk [vmem:[%s724_s3 + $0x20] sm:$0xff] %vm55_vm0, %v131_v53  ;;  %v134_v61 = vadd.f32 %v349_v30, %v133_v58  ;;  %189 = vst.msk [vmem:[%s724_s3 + $0x60] sm:$0xff] %vm55_vm0, %v163_v55  ;;  %v166_v62 = vadd.f32 %v349_v30, %v165_v60 }
  0xec   :  { %184 = vst.msk [vmem:[%s724_s3 + $0x38] sm:$0xff] %vm55_vm0, %v142_v57  ;;  %192 = vst.msk [vmem:[%s724_s3 + $0x78] sm:$0xff] %vm55_vm0, %v174_v59 }
  0xed   :  { %182 = vst.msk [vmem:[%s724_s3 + $0x28] sm:$0xff] %vm55_vm0, %v134_v61  ;;  %190 = vst.msk [vmem:[%s724_s3 + $0x68] sm:$0xff] %vm55_vm0, %v166_v62 }
  0xee   :  { %279 = vrot.lane.b32.xlu1 %v126_v41, %s395_s23  ;;  %209 = vrot.lane.b32.xlu0 %v115_v37, %s394_s2 }
  0xf2   :  { %295 = vrot.lane.b32.xlu1 %v158_v42, %s395_s23  ;;  %225 = vrot.lane.b32.xlu0 %v147_v38, %s394_s2 }
  0xf6   :  { %227 = vrot.lane.b32.xlu1 %v150_v45, %s394_s2  ;;  %273 = vrot.lane.b32.xlu0 %v115_v37, %s395_s23 }
  0xfa   :  { %275 = vrot.lane.b32.xlu1 %v118_v46, %s395_s23  ;;  %289 = vrot.lane.b32.xlu0 %v147_v38, %s395_s23 }
  0xfe   :  { %291 = vrot.lane.b32.xlu1 %v150_v45, %s395_s23  ;;  %211 = vrot.lane.b32.xlu0 %v118_v46, %s394_s2 }
 0x102   :  { %223 = vrot.lane.b32.xlu1 %v142_v57, %s394_s2  ;;  %221 = vrot.lane.b32.xlu0 %v139_v49, %s394_s2 }
 0x106   :  { %239 = vrot.lane.b32.xlu1 %v174_v59, %s394_s2  ;;  %237 = vrot.lane.b32.xlu0 %v171_v51, %s394_s2 }
 0x10a   :  { %287 = vrot.lane.b32.xlu1 %v142_v57, %s395_s23  ;;  %285 = vrot.lane.b32.xlu0 %v139_v49, %s395_s23 }
 0x10e   :  { %219 = vrot.lane.b32.xlu1 %v134_v61, %s394_s2  ;;  %217 = vrot.lane.b32.xlu0 %v131_v53, %s394_s2 }
 0x112   :  { %235 = vrot.lane.b32.xlu1 %v166_v62, %s394_s2  ;;  %233 = vrot.lane.b32.xlu0 %v163_v55, %s394_s2 }
 0x116   :  { %283 = vrot.lane.b32.xlu1 %v134_v61, %s395_s23  ;;  %281 = vrot.lane.b32.xlu0 %v131_v53, %s395_s23 }
 0x11a   :  { %299 = vrot.lane.b32.xlu1 %v166_v62, %s395_s23  ;;  %297 = vrot.lane.b32.xlu0 %v163_v55, %s395_s23 }
 0x11e   :  { %303 = vrot.lane.b32.xlu1 %v174_v59, %s395_s23  ;;  %301 = vrot.lane.b32.xlu0 %v171_v51, %s395_s23 }
 0x154   :  { %v230_v63 = vpop.permute.xlu0 %229  ;;  %v214_v0 = vpop.permute.xlu1 %213 }
 0x155   :  { %267 = vst.msk [vmem:[%s725_s4 + $0x50] sm:$0xff] %vm55_vm0, %v230_v63  ;;  %259 = vst.msk [vmem:[%s725_s4 + $0x10] sm:$0xff] %vm55_vm0, %v214_v0 }
 0x158   :  { %v278_v1 = vpop.permute.xlu0 %277  ;;  %v216_v2 = vpop.permute.xlu1 %215 }
 0x159   :  { %323 = vst.msk [vmem:[%s726_s5 + $0x10] sm:$0xff] %vm55_vm0, %v278_v1  ;;  %260 = vst.msk [vmem:[%s725_s4 + $0x18] sm:$0xff] %vm55_vm0, %v216_v2 }
 0x15c   :  { %v294_v3 = vpop.permute.xlu0 %293  ;;  %v232_v4 = vpop.permute.xlu1 %231 }
 0x15d   :  { %331 = vst.msk [vmem:[%s726_s5 + $0x50] sm:$0xff] %vm55_vm0, %v294_v3  ;;  %268 = vst.msk [vmem:[%s725_s4 + $0x58] sm:$0xff] %vm55_vm0, %v232_v4 }
 0x160   :  { %v280_v5 = vpop.permute.xlu1 %279  ;;  %v210_v6 = vpop.permute.xlu0 %209 }
 0x161   :  { %324 = vst.msk [vmem:[%s726_s5 + $0x18] sm:$0xff] %vm55_vm0, %v280_v5  ;;  %257 = vst.msk [vmem:[%s725_s4] sm:$0xff] %vm55_vm0, %v210_v6 }
 0x164   :  { %v296_v7 = vpop.permute.xlu1 %295  ;;  %v226_v8 = vpop.permute.xlu0 %225 }
 0x165   :  { %332 = vst.msk [vmem:[%s726_s5 + $0x58] sm:$0xff] %vm55_vm0, %v296_v7  ;;  %265 = vst.msk [vmem:[%s725_s4 + $0x40] sm:$0xff] %vm55_vm0, %v226_v8 }
 0x168   :  { %v228_v9 = vpop.permute.xlu1 %227  ;;  %v274_v10 = vpop.permute.xlu0 %273 }
 0x169   :  { %266 = vst.msk [vmem:[%s725_s4 + $0x48] sm:$0xff] %vm55_vm0, %v228_v9  ;;  %321 = vst.msk [vmem:[%s726_s5] sm:$0xff] %vm55_vm0, %v274_v10 }
 0x16c   :  { %v276_v11 = vpop.permute.xlu1 %275  ;;  %v290_v12 = vpop.permute.xlu0 %289 }
 0x16d   :  { %322 = vst.msk [vmem:[%s726_s5 + $0x8] sm:$0xff] %vm55_vm0, %v276_v11  ;;  %329 = vst.msk [vmem:[%s726_s5 + $0x40] sm:$0xff] %vm55_vm0, %v290_v12 }
 0x170   :  { %v292_v13 = vpop.permute.xlu1 %291  ;;  %v212_v14 = vpop.permute.xlu0 %211 }
 0x171   :  { %330 = vst.msk [vmem:[%s726_s5 + $0x48] sm:$0xff] %vm55_vm0, %v292_v13  ;;  %258 = vst.msk [vmem:[%s725_s4 + $0x8] sm:$0xff] %vm55_vm0, %v212_v14 }
 0x174   :  { %v224_v15 = vpop.permute.xlu1 %223  ;;  %v222_v16 = vpop.permute.xlu0 %221 }
 0x175   :  { %264 = vst.msk [vmem:[%s725_s4 + $0x38] sm:$0xff] %vm55_vm0, %v224_v15  ;;  %263 = vst.msk [vmem:[%s725_s4 + $0x30] sm:$0xff] %vm55_vm0, %v222_v16 }
 0x178   :  { %v240_v17 = vpop.permute.xlu1 %239  ;;  %v238_v18 = vpop.permute.xlu0 %237 }
 0x179   :  { %272 = vst.msk [vmem:[%s725_s4 + $0x78] sm:$0xff] %vm55_vm0, %v240_v17  ;;  %271 = vst.msk [vmem:[%s725_s4 + $0x70] sm:$0xff] %vm55_vm0, %v238_v18 }
 0x17c   :  { %v288_v19 = vpop.permute.xlu1 %287  ;;  %v286_v20 = vpop.permute.xlu0 %285 }
 0x17d   :  { %328 = vst.msk [vmem:[%s726_s5 + $0x38] sm:$0xff] %vm55_vm0, %v288_v19  ;;  %327 = vst.msk [vmem:[%s726_s5 + $0x30] sm:$0xff] %vm55_vm0, %v286_v20 }
 0x180   :  { %v220_v21 = vpop.permute.xlu1 %219  ;;  %v218_v22 = vpop.permute.xlu0 %217 }
 0x181   :  { %262 = vst.msk [vmem:[%s725_s4 + $0x28] sm:$0xff] %vm55_vm0, %v220_v21  ;;  %261 = vst.msk [vmem:[%s725_s4 + $0x20] sm:$0xff] %vm55_vm0, %v218_v22 }
 0x184   :  { %v236_v23 = vpop.permute.xlu1 %235  ;;  %v234_v24 = vpop.permute.xlu0 %233 }
 0x185   :  { %270 = vst.msk [vmem:[%s725_s4 + $0x68] sm:$0xff] %vm55_vm0, %v236_v23  ;;  %269 = vst.msk [vmem:[%s725_s4 + $0x60] sm:$0xff] %vm55_vm0, %v234_v24 }
 0x188   :  { %v284_v25 = vpop.permute.xlu1 %283  ;;  %v282_v26 = vpop.permute.xlu0 %281 }
 0x189   :  { %326 = vst.msk [vmem:[%s726_s5 + $0x28] sm:$0xff] %vm55_vm0, %v284_v25  ;;  %325 = vst.msk [vmem:[%s726_s5 + $0x20] sm:$0xff] %vm55_vm0, %v282_v26 }
 0x18c   :  { %v300_v27 = vpop.permute.xlu1 %299  ;;  %v298_v28 = vpop.permute.xlu0 %297 }
 0x18d   :  { %334 = vst.msk [vmem:[%s726_s5 + $0x68] sm:$0xff] %vm55_vm0, %v300_v27  ;;  %333 = vst.msk [vmem:[%s726_s5 + $0x60] sm:$0xff] %vm55_vm0, %v298_v28 }
 0x190   :  { %v304_v29 = vpop.permute.xlu1 %303  ;;  %v302_v30 = vpop.permute.xlu0 %301 }
 0x191   :  { %336 = vst.msk [vmem:[%s726_s5 + $0x78] sm:$0xff] %vm55_vm0, %v304_v29  ;;  %335 = vst.msk [vmem:[%s726_s5 + $0x70] sm:$0xff] %vm55_vm0, %v302_v30 }

// kernel: tpu_custom_call.1
= control target key start
LH: loop header
LB: loop body
LE: loop exit
PB: predicated region body
PF: predicated region fallthrough
CT: control target
= control target key end

     0   :  { %vm55_vm0 = vcmask 261120   ;;  %s395_s23 = smov 64   ;;  %s721_s1 = inlined_call_operand.vmem [shape: f32[32,96], index: 1, kind: input, shape index: {}]   ;;  %s722_s0 = inlined_call_operand.vmem [shape: f32[128,32], index: 0, kind: input, shape index: {}]   ;;  %s723_s2 = inlined_call_operand.vmem [shape: f32[1,96], index: 2, kind: input, shape index: {}]   ;;  %s724_s3 = inlined_call_operand.vmem [shape: f32[128,32], index: 3, kind: output, shape index: {0}]   ;;  %s725_s4 = inlined_call_operand.vmem [shape: f32[128,32], index: 4, kind: output, shape index: {1}]   ;;  %s726_s5 = inlined_call_operand.vmem [shape: f32[128,32], index: 5, kind: output, shape index: {2}]  }
   0x1   :  { %v42_v0 = vld [vmem:[%s721_s1] sm:$0xff]  ;;  %v43_v1 = vld [vmem:[%s721_s1 + $0x8] sm:$0xff]  ;;  %v44_v2 = vld [vmem:[%s721_s1 + $0x10] sm:$0xff] }
   0x2   :  { %v46_v3 = vpack.c.bf16 %v43_v1, %v42_v0  ;;  %v45_v4 = vld [vmem:[%s721_s1 + $0x18] sm:$0xff]  ;;  %v18_v5 = vld [vmem:[%s722_s0] sm:$0xff]  ;;  %v19_v6 = vld [vmem:[%s722_s0 + $0x8] sm:$0xff] }
   0x3   :  { %v47_v7 = vpack.c.bf16 %v45_v4, %v44_v2  ;;  %v34_v8 = vpack.c.bf16 %v19_v6, %v18_v5  ;;  %v26_v9 = vld [vmem:[%s722_s0 + $0x40] sm:$0xff]  ;;  %v27_v10 = vld [vmem:[%s722_s0 + $0x48] sm:$0xff]  ;;  %v20_v12 = vld [vmem:[%s722_s0 + $0x10] sm:$0xff] }
   0x4   :  { %368 = vmatprep.subr.bf16.mxu0 %v46_v3  ;;  %388 = vmatprep.subr.bf16.mxu1 %v46_v3  ;;  %v38_v11 = vpack.c.bf16 %v27_v10, %v26_v9  ;;  %v21_v13 = vld [vmem:[%s722_s0 + $0x18] sm:$0xff]  ;;  %v28_v14 = vld [vmem:[%s722_s0 + $0x50] sm:$0xff]  ;;  %v22_v16 = vld [vmem:[%s722_s0 + $0x20] sm:$0xff] }
   0x5   :  { %369 = vmatpush3.bf16.msra.mxu0 %v46_v3  ;;  %390 = vmatpush3.bf16.msra.mxu1 %v46_v3  ;;  %v29_v15 = vld [vmem:[%s722_s0 + $0x58] sm:$0xff]  ;;  %v23_v17 = vld [vmem:[%s722_s0 + $0x28] sm:$0xff]  ;;  %v30_v18 = vld [vmem:[%s722_s0 + $0x60] sm:$0xff]  ;;  %v35_v20 = vpack.c.bf16 %v21_v13, %v20_v12 }
   0x6   :  { %370 = vmatprep.subr.bf16.mxu0 %v47_v7  ;;  %389 = vmatprep.subr.bf16.mxu1 %v47_v7  ;;  %v31_v19 = vld [vmem:[%s722_s0 + $0x68] sm:$0xff]  ;;  %v39_v21 = vpack.c.bf16 %v29_v15, %v28_v14  ;;  %v36_v22 = vpack.c.bf16 %v23_v17, %v22_v16  ;;  %v24_v24 = vld [vmem:[%s722_s0 + $0x30] sm:$0xff]  ;;  %v25_v25 = vld [vmem:[%s722_s0 + $0x38] sm:$0xff] }
   0x7   :  { %372 = vmatprep.mubr.msk.bf16.mxu0 %vm55_vm0, %v34_v8  ;;  %380 = vmatprep.mubr.msk.bf16.mxu1 %vm55_vm0, %v38_v11  ;;  %v40_v23 = vpack.c.bf16 %v31_v19, %v30_v18  ;;  %v32_v26 = vld [vmem:[%s722_s0 + $0x70] sm:$0xff]  ;;  %v33_v27 = vld [vmem:[%s722_s0 + $0x78] sm:$0xff]  ;;  %v37_v28 = vpack.c.bf16 %v25_v25, %v24_v24  ;;  %v349_v30 = vld [vmem:[%s723_s2] ss:$0 sm:$0xff]  ;;  %s394_s2 = smov 96  }
   0x8   :  { %v41_v29 = vpack.c.bf16 %v33_v27, %v32_v26 }
   0x9   :  { %371 = vmatpush3.bf16.msra.mxu0 %v47_v7  ;;  %391 = vmatpush3.bf16.msra.mxu1 %v47_v7 }
   0xc   :  { %373 = vmatmul.mubr.msk.bf16.vlgmr.msra.gmra.mrb[0].mxu0 %vm55_vm0, %v35_v20  ;;  %381 = vmatmul.mubr.msk.bf16.vlgmr.msra.gmra.mrb[0].mxu1 %vm55_vm0, %v39_v21 }
   0xd   :  { %376 = vmatprep.mubr.msk.bf16.mxu0 %vm55_vm0, %v36_v22  ;;  %384 = vmatprep.mubr.msk.bf16.mxu1 %vm55_vm0, %v40_v23 }
  0x14   :  { %377 = vmatmul.mubr.msk.bf16.gmra.mrb[4].mxu0 %vm55_vm0, %v37_v28  ;;  %385 = vmatmul.mubr.msk.bf16.gmra.mrb[4].mxu1 %vm55_vm0, %v41_v29 }
  0xdf   :  { %v374_v31 = vpop.f32.mrb[0].mxu0  ;;  %v382_v32 = vpop.f32.mrb[0].mxu1 }
  0xe0   :  { %v123_v33 = vadd.f32 %v374_v31, %v349_v30  ;;  %v155_v34 = vadd.f32 %v382_v32, %v349_v30  ;;  %v114_v35 = vpop.f32.mrb[1].mxu0  ;;  %v146_v36 = vpop.f32.mrb[1].mxu1 }
  0xe1   :  { %v115_v37 = vadd.f32 %v349_v30, %v114_v35  ;;  %v147_v38 = vadd.f32 %v349_v30, %v146_v36  ;;  %v375_v39 = vpop.f32.mrb[2].mxu0  ;;  %v383_v40 = vpop.f32.mrb[2].mxu1 }
  0xe2   :  { %179 = vst.msk [vmem:[%s724_s3 + $0x10] sm:$0xff] %vm55_vm0, %v123_v33  ;;  %187 = vst.msk [vmem:[%s724_s3 + $0x50] sm:$0xff] %vm55_vm0, %v155_v34  ;;  %v126_v41 = vadd.f32 %v375_v39, %v349_v30  ;;  %v158_v42 = vadd.f32 %v383_v40, %v349_v30  ;;  %229 = vrot.lane.b32.xlu0 %v155_v34, %s394_s2  ;;  %v149_v43 = vpop.f32.mrb[3].mxu1  ;;  %213 = vrot.lane.b32.xlu1 %v123_v33, %s394_s2  ;;  %v117_v44 = vpop.f32.mrb[3].mxu0 }
  0xe3   :  { %177 = vst.msk [vmem:[%s724_s3] sm:$0xff] %vm55_vm0, %v115_v37  ;;  %185 = vst.msk [vmem:[%s724_s3 + $0x40] sm:$0xff] %vm55_vm0, %v147_v38  ;;  %v150_v45 = vadd.f32 %v349_v30, %v149_v43  ;;  %v118_v46 = vadd.f32 %v349_v30, %v117_v44 }
  0xe4   :  { %180 = vst.msk [vmem:[%s724_s3 + $0x18] sm:$0xff] %vm55_vm0, %v126_v41  ;;  %188 = vst.msk [vmem:[%s724_s3 + $0x58] sm:$0xff] %vm55_vm0, %v158_v42 }
  0xe5   :  { %186 = vst.msk [vmem:[%s724_s3 + $0x48] sm:$0xff] %vm55_vm0, %v150_v45  ;;  %178 = vst.msk [vmem:[%s724_s3 + $0x8] sm:$0xff] %vm55_vm0, %v118_v46 }
  0xe6   :  { %277 = vrot.lane.b32.xlu0 %v123_v33, %s395_s23  ;;  %215 = vrot.lane.b32.xlu1 %v126_v41, %s394_s2 }
  0xe7   :  { %v378_v47 = vpop.f32.mrb[4].mxu0  ;;  %v386_v48 = vpop.f32.mrb[4].mxu1 }
  0xe8   :  { %v139_v49 = vadd.f32 %v378_v47, %v349_v30  ;;  %v130_v50 = vpop.f32.mrb[5].mxu0  ;;  %v171_v51 = vadd.f32 %v386_v48, %v349_v30  ;;  %v162_v52 = vpop.f32.mrb[5].mxu1 }
  0xe9   :  { %v131_v53 = vadd.f32 %v349_v30, %v130_v50  ;;  %v379_v54 = vpop.f32.mrb[6].mxu0  ;;  %v163_v55 = vadd.f32 %v349_v30, %v162_v52  ;;  %v387_v56 = vpop.f32.mrb[6].mxu1 }
  0xea   :  { %293 = vrot.lane.b32.xlu0 %v155_v34, %s395_s23  ;;  %231 = vrot.lane.b32.xlu1 %v158_v42, %s394_s2  ;;  %183 = vst.msk [vmem:[%s724_s3 + $0x30] sm:$0xff] %vm55_vm0, %v139_v49  ;;  %v142_v57 = vadd.f32 %v379_v54, %v349_v30  ;;  %v133_v58 = vpop.f32.mrb[7].mxu0  ;;  %191 = vst.msk [vmem:[%s724_s3 + $0x70] sm:$0xff] %vm55_vm0, %v171_v51  ;;  %v174_v59 = vadd.f32 %v387_v56, %v349_v30  ;;  %v165_v60 = vpop.f32.mrb[7].mxu1 }
  0xeb   :  { %181 = vst.msk [vmem:[%s724_s3 + $0x20] sm:$0xff] %vm55_vm0, %v131_v53  ;;  %v134_v61 = vadd.f32 %v349_v30, %v133_v58  ;;  %189 = vst.msk [vmem:[%s724_s3 + $0x60] sm:$0xff] %vm55_vm0, %v163_v55  ;;  %v166_v62 = vadd.f32 %v349_v30, %v165_v60 }
  0xec   :  { %184 = vst.msk [vmem:[%s724_s3 + $0x38] sm:$0xff] %vm55_vm0, %v142_v57  ;;  %192 = vst.msk [vmem:[%s724_s3 + $0x78] sm:$0xff] %vm55_vm0, %v174_v59 }
  0xed   :  { %182 = vst.msk [vmem:[%s724_s3 + $0x28] sm:$0xff] %vm55_vm0, %v134_v61  ;;  %190 = vst.msk [vmem:[%s724_s3 + $0x68] sm:$0xff] %vm55_vm0, %v166_v62 }
  0xee   :  { %279 = vrot.lane.b32.xlu1 %v126_v41, %s395_s23  ;;  %209 = vrot.lane.b32.xlu0 %v115_v37, %s394_s2 }
  0xf2   :  { %295 = vrot.lane.b32.xlu1 %v158_v42, %s395_s23  ;;  %225 = vrot.lane.b32.xlu0 %v147_v38, %s394_s2 }
  0xf6   :  { %227 = vrot.lane.b32.xlu1 %v150_v45, %s394_s2  ;;  %273 = vrot.lane.b32.xlu0 %v115_v37, %s395_s23 }
  0xfa   :  { %275 = vrot.lane.b32.xlu1 %v118_v46, %s395_s23  ;;  %289 = vrot.lane.b32.xlu0 %v147_v38, %s395_s23 }
  0xfe   :  { %291 = vrot.lane.b32.xlu1 %v150_v45, %s395_s23  ;;  %211 = vrot.lane.b32.xlu0 %v118_v46, %s394_s2 }
 0x102   :  { %223 = vrot.lane.b32.xlu1 %v142_v57, %s394_s2  ;;  %221 = vrot.lane.b32.xlu0 %v139_v49, %s394_s2 }
 0x106   :  { %239 = vrot.lane.b32.xlu1 %v174_v59, %s394_s2  ;;  %237 = vrot.lane.b32.xlu0 %v171_v51, %s394_s2 }
 0x10a   :  { %287 = vrot.lane.b32.xlu1 %v142_v57, %s395_s23  ;;  %285 = vrot.lane.b32.xlu0 %v139_v49, %s395_s23 }
 0x10e   :  { %219 = vrot.lane.b32.xlu1 %v134_v61, %s394_s2  ;;  %217 = vrot.lane.b32.xlu0 %v131_v53, %s394_s2 }
 0x112   :  { %235 = vrot.lane.b32.xlu1 %v166_v62, %s394_s2  ;;  %233 = vrot.lane.b32.xlu0 %v163_v55, %s394_s2 }
 0x116   :  { %283 = vrot.lane.b32.xlu1 %v134_v61, %s395_s23  ;;  %281 = vrot.lane.b32.xlu0 %v131_v53, %s395_s23 }
 0x11a   :  { %299 = vrot.lane.b32.xlu1 %v166_v62, %s395_s23  ;;  %297 = vrot.lane.b32.xlu0 %v163_v55, %s395_s23 }
 0x11e   :  { %303 = vrot.lane.b32.xlu1 %v174_v59, %s395_s23  ;;  %301 = vrot.lane.b32.xlu0 %v171_v51, %s395_s23 }
 0x154   :  { %v230_v63 = vpop.permute.xlu0 %229  ;;  %v214_v0 = vpop.permute.xlu1 %213 }
 0x155   :  { %267 = vst.msk [vmem:[%s725_s4 + $0x50] sm:$0xff] %vm55_vm0, %v230_v63  ;;  %259 = vst.msk [vmem:[%s725_s4 + $0x10] sm:$0xff] %vm55_vm0, %v214_v0 }
 0x158   :  { %v278_v1 = vpop.permute.xlu0 %277  ;;  %v216_v2 = vpop.permute.xlu1 %215 }
 0x159   :  { %323 = vst.msk [vmem:[%s726_s5 + $0x10] sm:$0xff] %vm55_vm0, %v278_v1  ;;  %260 = vst.msk [vmem:[%s725_s4 + $0x18] sm:$0xff] %vm55_vm0, %v216_v2 }
 0x15c   :  { %v294_v3 = vpop.permute.xlu0 %293  ;;  %v232_v4 = vpop.permute.xlu1 %231 }
 0x15d   :  { %331 = vst.msk [vmem:[%s726_s5 + $0x50] sm:$0xff] %vm55_vm0, %v294_v3  ;;  %268 = vst.msk [vmem:[%s725_s4 + $0x58] sm:$0xff] %vm55_vm0, %v232_v4 }
 0x160   :  { %v280_v5 = vpop.permute.xlu1 %279  ;;  %v210_v6 = vpop.permute.xlu0 %209 }
 0x161   :  { %324 = vst.msk [vmem:[%s726_s5 + $0x18] sm:$0xff] %vm55_vm0, %v280_v5  ;;  %257 = vst.msk [vmem:[%s725_s4] sm:$0xff] %vm55_vm0, %v210_v6 }
 0x164   :  { %v296_v7 = vpop.permute.xlu1 %295  ;;  %v226_v8 = vpop.permute.xlu0 %225 }
 0x165   :  { %332 = vst.msk [vmem:[%s726_s5 + $0x58] sm:$0xff] %vm55_vm0, %v296_v7  ;;  %265 = vst.msk [vmem:[%s725_s4 + $0x40] sm:$0xff] %vm55_vm0, %v226_v8 }
 0x168   :  { %v228_v9 = vpop.permute.xlu1 %227  ;;  %v274_v10 = vpop.permute.xlu0 %273 }
 0x169   :  { %266 = vst.msk [vmem:[%s725_s4 + $0x48] sm:$0xff] %vm55_vm0, %v228_v9  ;;  %321 = vst.msk [vmem:[%s726_s5] sm:$0xff] %vm55_vm0, %v274_v10 }
 0x16c   :  { %v276_v11 = vpop.permute.xlu1 %275  ;;  %v290_v12 = vpop.permute.xlu0 %289 }
 0x16d   :  { %322 = vst.msk [vmem:[%s726_s5 + $0x8] sm:$0xff] %vm55_vm0, %v276_v11  ;;  %329 = vst.msk [vmem:[%s726_s5 + $0x40] sm:$0xff] %vm55_vm0, %v290_v12 }
 0x170   :  { %v292_v13 = vpop.permute.xlu1 %291  ;;  %v212_v14 = vpop.permute.xlu0 %211 }
 0x171   :  { %330 = vst.msk [vmem:[%s726_s5 + $0x48] sm:$0xff] %vm55_vm0, %v292_v13  ;;  %258 = vst.msk [vmem:[%s725_s4 + $0x8] sm:$0xff] %vm55_vm0, %v212_v14 }
 0x174   :  { %v224_v15 = vpop.permute.xlu1 %223  ;;  %v222_v16 = vpop.permute.xlu0 %221 }
 0x175   :  { %264 = vst.msk [vmem:[%s725_s4 + $0x38] sm:$0xff] %vm55_vm0, %v224_v15  ;;  %263 = vst.msk [vmem:[%s725_s4 + $0x30] sm:$0xff] %vm55_vm0, %v222_v16 }
 0x178   :  { %v240_v17 = vpop.permute.xlu1 %239  ;;  %v238_v18 = vpop.permute.xlu0 %237 }
 0x179   :  { %272 = vst.msk [vmem:[%s725_s4 + $0x78] sm:$0xff] %vm55_vm0, %v240_v17  ;;  %271 = vst.msk [vmem:[%s725_s4 + $0x70] sm:$0xff] %vm55_vm0, %v238_v18 }
 0x17c   :  { %v288_v19 = vpop.permute.xlu1 %287  ;;  %v286_v20 = vpop.permute.xlu0 %285 }
 0x17d   :  { %328 = vst.msk [vmem:[%s726_s5 + $0x38] sm:$0xff] %vm55_vm0, %v288_v19  ;;  %327 = vst.msk [vmem:[%s726_s5 + $0x30] sm:$0xff] %vm55_vm0, %v286_v20 }
 0x180   :  { %v220_v21 = vpop.permute.xlu1 %219  ;;  %v218_v22 = vpop.permute.xlu0 %217 }
 0x181   :  { %262 = vst.msk [vmem:[%s725_s4 + $0x28] sm:$0xff] %vm55_vm0, %v220_v21  ;;  %261 = vst.msk [vmem:[%s725_s4 + $0x20] sm:$0xff] %vm55_vm0, %v218_v22 }
 0x184   :  { %v236_v23 = vpop.permute.xlu1 %235  ;;  %v234_v24 = vpop.permute.xlu0 %233 }
 0x185   :  { %270 = vst.msk [vmem:[%s725_s4 + $0x68] sm:$0xff] %vm55_vm0, %v236_v23  ;;  %269 = vst.msk [vmem:[%s725_s4 + $0x60] sm:$0xff] %vm55_vm0, %v234_v24 }
 0x188   :  { %v284_v25 = vpop.permute.xlu1 %283  ;;  %v282_v26 = vpop.permute.xlu0 %281 }
 0x189   :  { %326 = vst.msk [vmem:[%s726_s5 + $0x28] sm:$0xff] %vm55_vm0, %v284_v25  ;;  %325 = vst.msk [vmem:[%s726_s5 + $0x20] sm:$0xff] %vm55_vm0, %v282_v26 }
 0x18c   :  { %v300_v27 = vpop.permute.xlu1 %299  ;;  %v298_v28 = vpop.permute.xlu0 %297 }
 0x18d   :  { %334 = vst.msk [vmem:[%s726_s5 + $0x68] sm:$0xff] %vm55_vm0, %v300_v27  ;;  %333 = vst.msk [vmem:[%s726_s5 + $0x60] sm:$0xff] %vm55_vm0, %v298_v28 }
 0x190   :  { %v304_v29 = vpop.permute.xlu1 %303  ;;  %v302_v30 = vpop.permute.xlu0 %301 }
 0x191   :  { %336 = vst.msk [vmem:[%s726_s5 + $0x78] sm:$0xff] %vm55_vm0, %v304_v29  ;;  %335 = vst.msk [vmem:[%s726_s5 + $0x70] sm:$0xff] %vm55_vm0, %v302_v30 }

</bundles_post_ra>
